<compile_context>
chip_gen: v7x
topology: tpu7x:2x2x1
jax: 0.10.0
libtpu: 0.0.40
codegen_flags: <defaults>
</compile_context>

<pallas_src>
import functools

import jax
import jax.numpy as jnp
from jax.experimental import pallas as pl
from jax.experimental.pallas import tpu as pltpu


def _round_up(v, m):
    return (v + m - 1) // m * m


def _cdiv(a, b):
    return -(-a // b)


def _moe_kernel(x_ref, w1_ref, b1_ref, w2_ref, b2_ref, *rest, branch, mode):
    if mode == "self":
        roll_ref, o_ref = rest
    elif mode == "message":
        (o_ref,) = rest
    else:
        raise NotImplementedError(mode)

    mm_dt = w1_ref.dtype
    # fc1 + ReLU.  x is cast to the matmul dtype in-register (free VPU work);
    # the MXU accumulates in f32, bias/ReLU stay in f32.
    h = jnp.dot(x_ref[...].astype(mm_dt), w1_ref[...],
                preferred_element_type=jnp.float32)
    h = jnp.maximum(h + b1_ref[...], 0.0)

    # fc2 (hidden is zero-padded to 128 lanes in the weights -> exact).
    z = jnp.dot(h.astype(w2_ref.dtype), w2_ref[...],
                preferred_element_type=jnp.float32)
    z = z + b2_ref[...]

    if mode == "self":
        # Softmax over the branch axis.  Column q = b*output_dim + j.
        # roll_ref is the 0/1 permutation matrix that cyclically shifts the
        # lane axis by output_dim; chained matmuls expose every other branch's
        # value at each column.  Products are with exact 0.0/1.0 in f32, so
        # max/sum below are exact cross-branch reductions.
        roll = roll_ref[...]
        zr, m = z, z
        for _ in range(branch - 1):
            zr = jnp.dot(zr, roll, preferred_element_type=jnp.float32)
            m = jnp.maximum(m, zr)
        e = jnp.exp(z - m)
        er, denom = e, e
        for _ in range(branch - 1):
            er = jnp.dot(er, roll, preferred_element_type=jnp.float32)
            denom = denom + er
        # Exact reciprocal; approx=True (EUP slot) is a free micro-opt if
        # ~2^-12 relative error is acceptable — kernel is memory-bound anyway.
        o_ref[...] = (e * pl.reciprocal(denom, approx=False)).astype(o_ref.dtype)
    else:  # message
        o_ref[...] = jax.nn.sigmoid(z).astype(o_ref.dtype)


def prepare_moe_weights(w1, b1, w2, b2, *, branch, output_dim,
                        matmul_dtype=jnp.bfloat16):
    """One-time weight layout prep (call once, reuse across forward calls).

    Layout: w1 is [input_dim, hidden], w2 is [hidden, branch*output_dim]
    (transposed vs. PyTorch so the kernel computes x @ W + b).  hidden is
    zero-padded to a multiple of 128 lanes (exact).  Also builds the 0/1
    roll-by-output_dim permutation matrix used for the branch softmax.
    """
    input_dim, hidden = w1.shape
    out_flat = branch * output_dim
    assert b1.shape == (hidden,)
    assert w2.shape == (hidden, out_flat)
    assert b2.shape == (out_flat,)

    f32 = jnp.float32
    hidden_pad = _round_up(hidden, 128)
    w1_p = jnp.pad(w1, ((0, 0), (0, hidden_pad - hidden))).astype(matmul_dtype)
    b1_p = jnp.pad(b1, (0, hidden_pad - hidden)).astype(f32).reshape(1, hidden_pad)
    w2_p = jnp.pad(w2, ((0, hidden_pad - hidden), (0, 0))).astype(matmul_dtype)
    b2_p = b2.astype(f32).reshape(1, out_flat)

    idx = jnp.arange(out_flat)
    roll_p = jnp.equal(idx[None, :], (idx[:, None] + output_dim) % out_flat)
    roll_p = roll_p.astype(f32)
    return (w1_p, b1_p, w2_p, b2_p, roll_p)


def moe_forward(x, params, *, branch, output_dim, mode="self", tile_n=1024,
                out_dtype=jnp.float32):
    """x: [N, input_dim]; params from prepare_moe_weights.
    Returns [N, branch, output_dim] in out_dtype."""
    w1_p, b1_p, w2_p, b2_p, roll_p = params
    n, input_dim = x.shape
    assert w1_p.shape[0] == input_dim
    hidden_pad = w1_p.shape[1]
    out_flat = w2_p.shape[1]
    assert out_flat == branch * output_dim

    # Row tiling: tile_n is an upper bound on rows/step.  Keep tiles a
    # multiple of 8 and make sure a moderate-sized problem yields >=2 grid
    # steps so both v7x TensorCores get work (harmless on v5e/v6e).
    n8 = _round_up(max(n, 1), 8)
    g = _cdiv(n8, max(tile_n, 8))
    if n8 >= 16:
        g = max(g, 2)
    t = _round_up(_cdiv(n8, g), 8)
    n_pad = g * t

    x_in = x if n_pad == n else jnp.pad(x, ((0, n_pad - n), (0, 0)))

    in_specs = [
        pl.BlockSpec((t, input_dim), lambda i: (i, 0)),          # x (f32)
        pl.BlockSpec((input_dim, hidden_pad), lambda i: (0, 0)), # W1
        pl.BlockSpec((1, hidden_pad), lambda i: (0, 0)),         # b1
        pl.BlockSpec((hidden_pad, out_flat), lambda i: (0, 0)),  # W2
        pl.BlockSpec((1, out_flat), lambda i: (0, 0)),           # b2
    ]
    args = [x_in, w1_p, b1_p, w2_p, b2_p]
    if mode == "self":
        in_specs.append(pl.BlockSpec((out_flat, out_flat), lambda i: (0, 0)))
        args.append(roll_p)

    kernel = functools.partial(_moe_kernel, branch=branch, mode=mode)
    out = pl.pallas_call(
        kernel,
        out_shape=jax.ShapeDtypeStruct((n_pad, out_flat), out_dtype),
        grid_spec=pltpu.PrefetchScalarGridSpec(
            num_scalar_prefetch=0,
            grid=(g,),
            in_specs=in_specs,
            out_specs=pl.BlockSpec((t, out_flat), lambda i: (i, 0)),
        ),
        compiler_params=pltpu.CompilerParams(
            dimension_semantics=("parallel",)),
    )(*args)

    if n_pad != n:
        out = out[:n]
    return out.reshape(n, branch, output_dim)


def _reference(x, w1, b1, w2, b2, branch, output_dim, mode, matmul_dtype):
    mm = matmul_dtype
    h = jnp.dot(x.astype(mm), w1.astype(mm),
                preferred_element_type=jnp.float32) + b1
    h = jnp.maximum(h, 0.0)
    z = jnp.dot(h.astype(mm), w2.astype(mm),
                preferred_element_type=jnp.float32) + b2
    z = z.reshape(x.shape[0], branch, output_dim)
    if mode == "self":
        return jax.nn.softmax(z, axis=1)
    return jax.nn.sigmoid(z)


if __name__ == "__main__":
    # Shapes consistent with the module: hidden = input_dim // 4.
    INPUT_DIM, BRANCH, OUTPUT_DIM = 32, 4, 16
    HIDDEN = INPUT_DIM // 4

    key = jax.random.PRNGKey(0)
    kx, k1, k2, k3, k4 = jax.random.split(key, 5)

    w1 = jax.random.uniform(k1, (INPUT_DIM, HIDDEN), dtype=jnp.float32,
                            minval=-1.0, maxval=1.0) / jnp.sqrt(INPUT_DIM)
    b1 = jax.random.uniform(k2, (HIDDEN,), dtype=jnp.float32,
                            minval=-1.0, maxval=1.0) / jnp.sqrt(INPUT_DIM)
    w2 = jax.random.uniform(k3, (HIDDEN, BRANCH * OUTPUT_DIM),
                            dtype=jnp.float32,
                            minval=-1.0, maxval=1.0) / jnp.sqrt(HIDDEN)
    b2 = jax.random.uniform(k4, (BRANCH * OUTPUT_DIM,), dtype=jnp.float32,
                            minval=-1.0, maxval=1.0) / jnp.sqrt(HIDDEN)

    # Weight layout prep happens ONCE (hoisted out of the forward path).
    params = prepare_moe_weights(w1, b1, w2, b2, branch=BRANCH,
                                 output_dim=OUTPUT_DIM)

    # Test 1: mode="self" with N not a multiple of the row tile -> exercises
    # row padding + a multi-step "parallel" grid (4 steps at tile_n=64).
    fwd_self = jax.jit(functools.partial(
        moe_forward, branch=BRANCH, output_dim=OUTPUT_DIM, mode="self",
        tile_n=64))
    N1 = 200
    x1 = jax.random.normal(kx, (N1, INPUT_DIM), dtype=jnp.float32)
    out1 = jax.block_until_ready(fwd_self(x1, params))
    ref1 = _reference(x1, w1, b1, w2, b2, BRANCH, OUTPUT_DIM, "self",
                      jnp.bfloat16)
    assert out1.shape == (N1, BRANCH, OUTPUT_DIM)
    assert jnp.allclose(out1, ref1, atol=1e-4, rtol=1e-4), "self-mode mismatch"
    assert jnp.allclose(out1.sum(axis=1), 1.0, atol=1e-4), "softmax not normalized"

    # Test 2: mode="message", N a multiple of the tile -> no row padding and
    # the minimum 2-step grid (v7x megacore split).
    fwd_msg = jax.jit(functools.partial(
        moe_forward, branch=BRANCH, output_dim=OUTPUT_DIM, mode="message"))
    N2 = 128
    x2 = jax.random.normal(jax.random.fold_in(kx, 1), (N2, INPUT_DIM),
                           dtype=jnp.float32)
    out2 = jax.block_until_ready(fwd_msg(x2, params))
    ref2 = _reference(x2, w1, b1, w2, b2, BRANCH, OUTPUT_DIM, "message",
                      jnp.bfloat16)
    assert out2.shape == (N2, BRANCH, OUTPUT_DIM)
    assert jnp.allclose(out2, ref2, atol=1e-4, rtol=1e-4), "message-mode mismatch"

    print("KERNEL_OK")
</pallas_src>

<mosaic_0001>
module attributes {stable_mosaic.version = 11 : i64} {
  func.func @_moe_kernel(%arg0: i32, %arg1: memref<56x32xf32, #tpu.memory_space<vmem>>, %arg2: memref<32x128xbf16, #tpu.memory_space<vmem>>, %arg3: memref<1x128xf32, #tpu.memory_space<vmem>>, %arg4: memref<128x64xbf16, #tpu.memory_space<vmem>>, %arg5: memref<1x64xf32, #tpu.memory_space<vmem>>, %arg6: memref<64x64xf32, #tpu.memory_space<vmem>>, %arg7: memref<56x64xf32, #tpu.memory_space<vmem>>) attributes {dimension_semantics = [#tpu.dimension_semantics<parallel>], iteration_bounds = array<i64: 4>, scalar_prefetch = 0 : i64, scratch_operands = 0 : i64, tpu.core_type = #tpu.core_type<tc>, window_params = [{transform_indices = @transform_0, window_bounds = array<i64: 56, 32>}, {pipeline_mode = #tpu.pipeline_mode<synchronous>, transform_indices = @transform_1, window_bounds = array<i64: 32, 128>}, {pipeline_mode = #tpu.pipeline_mode<synchronous>, transform_indices = @transform_2, window_bounds = array<i64: 1, 128>}, {pipeline_mode = #tpu.pipeline_mode<synchronous>, transform_indices = @transform_3, window_bounds = array<i64: 128, 64>}, {pipeline_mode = #tpu.pipeline_mode<synchronous>, transform_indices = @transform_4, window_bounds = array<i64: 1, 64>}, {pipeline_mode = #tpu.pipeline_mode<synchronous>, transform_indices = @transform_5, window_bounds = array<i64: 64, 64>}, {transform_indices = @transform_6, window_bounds = array<i64: 56, 64>}]} {
    %c0 = arith.constant 0 : index
    %c0_0 = arith.constant 0 : index
    %0 = vector.load %arg1[%c0, %c0_0] : memref<56x32xf32, #tpu.memory_space<vmem>>, vector<56x32xf32>
    %1 = arith.truncf %0 : vector<56x32xf32> to vector<56x32xbf16>
    %c0_1 = arith.constant 0 : index
    %c0_2 = arith.constant 0 : index
    %2 = vector.load %arg2[%c0_1, %c0_2] : memref<32x128xbf16, #tpu.memory_space<vmem>>, vector<32x128xbf16>
    %cst = arith.constant dense<0.000000e+00> : vector<56x128xf32>
    %3 = tpu.matmul %1, %2, %cst {dimension_numbers = #tpu.dot_dimension_numbers<[1], [0], [0], [1], [0, 0, 1, 1], [], []>} : vector<56x32xbf16>, vector<32x128xbf16>, vector<56x128xf32> -> vector<56x128xf32>
    %c0_3 = arith.constant 0 : index
    %c0_4 = arith.constant 0 : index
    %4 = vector.load %arg3[%c0_3, %c0_4] : memref<1x128xf32, #tpu.memory_space<vmem>>, vector<1x128xf32>
    %5 = vector.broadcast %4 : vector<1x128xf32> to vector<56x128xf32>
    %6 = arith.addf %3, %5 : vector<56x128xf32>
    %cst_5 = arith.constant 0.000000e+00 : f32
    %7 = vector.broadcast %cst_5 : f32 to vector<56x128xf32>
    %8 = arith.maximumf %6, %7 : vector<56x128xf32>
    %9 = arith.truncf %8 : vector<56x128xf32> to vector<56x128xbf16>
    %c0_6 = arith.constant 0 : index
    %c0_7 = arith.constant 0 : index
    %10 = vector.load %arg4[%c0_6, %c0_7] : memref<128x64xbf16, #tpu.memory_space<vmem>>, vector<128x64xbf16>
    %cst_8 = arith.constant dense<0.000000e+00> : vector<56x64xf32>
    %11 = tpu.matmul %9, %10, %cst_8 {dimension_numbers = #tpu.dot_dimension_numbers<[1], [0], [0], [1], [0, 0, 1, 1], [], []>} : vector<56x128xbf16>, vector<128x64xbf16>, vector<56x64xf32> -> vector<56x64xf32>
    %c0_9 = arith.constant 0 : index
    %c0_10 = arith.constant 0 : index
    %12 = vector.load %arg5[%c0_9, %c0_10] : memref<1x64xf32, #tpu.memory_space<vmem>>, vector<1x64xf32>
    %13 = vector.broadcast %12 : vector<1x64xf32> to vector<56x64xf32>
    %14 = arith.addf %11, %13 : vector<56x64xf32>
    %c0_11 = arith.constant 0 : index
    %c0_12 = arith.constant 0 : index
    %15 = vector.load %arg6[%c0_11, %c0_12] : memref<64x64xf32, #tpu.memory_space<vmem>>, vector<64x64xf32>
    %cst_13 = arith.constant dense<0.000000e+00> : vector<56x64xf32>
    %16 = tpu.matmul %14, %15, %cst_13 {dimension_numbers = #tpu.dot_dimension_numbers<[1], [0], [0], [1], [0, 0, 1, 1], [], []>} : vector<56x64xf32>, vector<64x64xf32>, vector<56x64xf32> -> vector<56x64xf32>
    %17 = arith.maximumf %14, %16 : vector<56x64xf32>
    %cst_14 = arith.constant dense<0.000000e+00> : vector<56x64xf32>
    %18 = tpu.matmul %16, %15, %cst_14 {dimension_numbers = #tpu.dot_dimension_numbers<[1], [0], [0], [1], [0, 0, 1, 1], [], []>} : vector<56x64xf32>, vector<64x64xf32>, vector<56x64xf32> -> vector<56x64xf32>
    %19 = arith.maximumf %17, %18 : vector<56x64xf32>
    %cst_15 = arith.constant dense<0.000000e+00> : vector<56x64xf32>
    %20 = tpu.matmul %18, %15, %cst_15 {dimension_numbers = #tpu.dot_dimension_numbers<[1], [0], [0], [1], [0, 0, 1, 1], [], []>} : vector<56x64xf32>, vector<64x64xf32>, vector<56x64xf32> -> vector<56x64xf32>
    %21 = arith.maximumf %19, %20 : vector<56x64xf32>
    %22 = arith.subf %14, %21 : vector<56x64xf32>
    %23 = math.exp %22 : vector<56x64xf32>
    %cst_16 = arith.constant dense<0.000000e+00> : vector<56x64xf32>
    %24 = tpu.matmul %23, %15, %cst_16 {dimension_numbers = #tpu.dot_dimension_numbers<[1], [0], [0], [1], [0, 0, 1, 1], [], []>} : vector<56x64xf32>, vector<64x64xf32>, vector<56x64xf32> -> vector<56x64xf32>
    %25 = arith.addf %23, %24 : vector<56x64xf32>
    %cst_17 = arith.constant dense<0.000000e+00> : vector<56x64xf32>
    %26 = tpu.matmul %24, %15, %cst_17 {dimension_numbers = #tpu.dot_dimension_numbers<[1], [0], [0], [1], [0, 0, 1, 1], [], []>} : vector<56x64xf32>, vector<64x64xf32>, vector<56x64xf32> -> vector<56x64xf32>
    %27 = arith.addf %25, %26 : vector<56x64xf32>
    %cst_18 = arith.constant dense<0.000000e+00> : vector<56x64xf32>
    %28 = tpu.matmul %26, %15, %cst_18 {dimension_numbers = #tpu.dot_dimension_numbers<[1], [0], [0], [1], [0, 0, 1, 1], [], []>} : vector<56x64xf32>, vector<64x64xf32>, vector<56x64xf32> -> vector<56x64xf32>
    %29 = arith.addf %27, %28 : vector<56x64xf32>
    %30 = tpu.reciprocal %29 : vector<56x64xf32> -> vector<56x64xf32>
    %31 = arith.mulf %23, %30 : vector<56x64xf32>
    %c0_19 = arith.constant 0 : index
    %c0_20 = arith.constant 0 : index
    %32 = vector.load %arg7[%c0_19, %c0_20] : memref<56x64xf32, #tpu.memory_space<vmem>>, vector<56x64xf32>
    tpu.vector_store %arg7[%c0_19, %c0_20], %31 {strides = array<i32>} : memref<56x64xf32, #tpu.memory_space<vmem>>, vector<56x64xf32>,
    return
  }
  func.func @transform_0(%arg0: i32) -> (i32, i32) {
    %c0_i32 = arith.constant 0 : i32
    %c0_i32_0 = arith.constant 0 : i32
    return %arg0, %c0_i32 : i32, i32
  }
  func.func @transform_1(%arg0: i32) -> (i32, i32) {
    %c0_i32 = arith.constant 0 : i32
    %c0_i32_0 = arith.constant 0 : i32
    %c0_i32_1 = arith.constant 0 : i32
    return %c0_i32, %c0_i32_0 : i32, i32
  }
  func.func @transform_2(%arg0: i32) -> (i32, i32) {
    %c0_i32 = arith.constant 0 : i32
    %c0_i32_0 = arith.constant 0 : i32
    %c0_i32_1 = arith.constant 0 : i32
    return %c0_i32, %c0_i32_0 : i32, i32
  }
  func.func @transform_3(%arg0: i32) -> (i32, i32) {
    %c0_i32 = arith.constant 0 : i32
    %c0_i32_0 = arith.constant 0 : i32
    %c0_i32_1 = arith.constant 0 : i32
    return %c0_i32, %c0_i32_0 : i32, i32
  }
  func.func @transform_4(%arg0: i32) -> (i32, i32) {
    %c0_i32 = arith.constant 0 : i32
    %c0_i32_0 = arith.constant 0 : i32
    %c0_i32_1 = arith.constant 0 : i32
    return %c0_i32, %c0_i32_0 : i32, i32
  }
  func.func @transform_5(%arg0: i32) -> (i32, i32) {
    %c0_i32 = arith.constant 0 : i32
    %c0_i32_0 = arith.constant 0 : i32
    %c0_i32_1 = arith.constant 0 : i32
    return %c0_i32, %c0_i32_0 : i32, i32
  }
  func.func @transform_6(%arg0: i32) -> (i32, i32) {
    %c0_i32 = arith.constant 0 : i32
    %c0_i32_0 = arith.constant 0 : i32
    return %arg0, %c0_i32 : i32, i32
  }
}

</mosaic_0001>

<bundles_post_ra>
// kernel: moe_forward.1
= control target key start
LH: loop header
LB: loop body
LE: loop exit
PB: predicated region body
PF: predicated region fallthrough
CT: control target
= control target key end

     0   :  { %s1996_s21 = smov 0   ;;  %s2360_s0 = inlined_call_operand.vmem [shape: f32[224,32], index: 0, kind: input, shape index: {}]   ;;  %s2361_s1 = inlined_call_operand.vmem [shape: bf16[32,128], index: 1, kind: input, shape index: {}]   ;;  %s2362_s2 = inlined_call_operand.vmem [shape: f32[1,128], index: 2, kind: input, shape index: {}]   ;;  %s2363_s3 = inlined_call_operand.vmem [shape: bf16[128,64], index: 3, kind: input, shape index: {}]   ;;  %s2364_s4 = inlined_call_operand.vmem [shape: f32[1,64], index: 4, kind: input, shape index: {}]   ;;  %s2365_s5 = inlined_call_operand.vmem [shape: f32[64,64], index: 5, kind: input, shape index: {}]   ;;  %s2366_s6 = inlined_call_operand.vmem [shape: f32[224,64], index: 6, kind: output, shape index: {}]  }
   0x1 LB: > { %s1388_s22 = sadd.s32 4294967295, %s1956_s21   ;;  %p1392_p0 = scmp.ge.s32.totalorder %s1956_s21, 1  ;;  %s1956_s21 = sphi %s1996_s21, %s16_s21  }
   0x2   : > { %p213_p1 = scmp.lt.s32.totalorder %s1956_s21, 5 }
   0x4   : > { %p214_p2 = pnand %p1392_p0, %p213_p1 }
   0x5   : > { %v1912_v0 = vld [vmem:[%s2361_s1] sm:$0xff] (!%p214_p2)   ;;  %s243_s25 = smul.u32 (!%p214_p2), 7, %s1388_s22  ;;  %v1913_v1 = vld [vmem:[%s2361_s1 + $0x8] sm:$0xff] (!%p214_p2)   ;;  %v1916_v4 = vld [vmem:[%s2363_s3 + $0x10] sm:$0xff] (!%p214_p2)   ;;  %vm290_vm0 = vcmask (!%p214_p2), 261120   ;;  %v1958_v24 = vmov (!%p214_p2), 0.0|0.0  }
   0x6   : > { %217 = sbr.rel (%p214_p2) target bundleno = 1786 (0x6fa), region = 44  ;;  %1563 = vmatprep.subr.bf16.mxu0 (!%p214_p2), %v1912_v0  ;;  %v1914_v2 = vld [vmem:[%s2363_s3] sm:$0xff] (!%p214_p2)   ;;  %v1915_v3 = vld [vmem:[%s2363_s3 + $0x8] sm:$0xff] (!%p214_p2)   ;;  %v1917_v14 = vld [vmem:[%s2363_s3 + $0x18] sm:$0xff] (!%p214_p2)   ;;  %vm1959_vm1 = vmmov (!%p214_p2), 0   ;;  %v1960_v61 = vmov (!%p214_p2), 0.0  }
   0x7   : > { %p244_p3 = scmp.lt.s32.totalorder (!%p214_p2), %s243_s25, 27  ;;  %1564 = vmatpush3.bf16.msra.mxu0 (!%p214_p2), %v1912_v0  ;;  %1575 = vmatprep.subr.bf16.mxu1 (!%p214_p2), %v1914_v2  ;;  %v1918_v16 = vld [vmem:[%s2363_s3 + $0x20] sm:$0xff] (!%p214_p2)   ;;  %v1919_v18 = vld [vmem:[%s2363_s3 + $0x28] sm:$0xff] (!%p214_p2)   ;;  %v1920_v19 = vld [vmem:[%s2363_s3 + $0x30] sm:$0xff] (!%p214_p2)   ;;  %vm521_vm2 = vcmask (!%p214_p2), 523264  }
   0x8   : > { %1565 = vmatprep.subr.bf16.mxu0 (!%p214_p2), %v1913_v1  ;;  %1576 = vmatpush3.bf16.msra.mxu1 (!%p214_p2), %v1914_v2  ;;  %v1921_v20 = vld [vmem:[%s2363_s3 + $0x38] sm:$0xff] (!%p214_p2)   ;;  %v513_v21 = vld [vmem:[%s2365_s5] sm:$0xff] (!%p214_p2)  ;;  %v514_v22 = vld [vmem:[%s2365_s5 + $0x8] sm:$0xff] (!%p214_p2) }
   0x9   : > { %1577 = vmatprep.subr.bf16.mxu1 (!%p214_p2), %v1915_v3  ;;  %v515_v23 = vld [vmem:[%s2365_s5 + $0x10] sm:$0xff] (!%p214_p2)  ;;  %v2056_v25 = vpack.c.bf16 (!%p214_p2), %v514_v22, %v513_v21  ;;  %v516_v26 = vld [vmem:[%s2365_s5 + $0x18] sm:$0xff] (!%p214_p2)  ;;  %v517_v28 = vld [vmem:[%s2365_s5 + $0x20] sm:$0xff] (!%p214_p2) }
   0xa   : > { %v2063_v27 = vpack.c.bf16 (!%p214_p2), %v516_v26, %v515_v23  ;;  %v518_v29 = vld [vmem:[%s2365_s5 + $0x28] sm:$0xff] (!%p214_p2)  ;;  %v1395_v31 = vld [vmem:[%s2362_s2] ss:$0 sm:$0xff] (!%p214_p2)  ;;  %v519_v58 = vld [vmem:[%s2365_s5 + $0x30] sm:$0xff] (!%p214_p2) }
   0xb   : > { %1566 = vmatpush3.bf16.msra.mxu0 (!%p214_p2), %v1913_v1  ;;  %v2073_v30 = vpack.c.bf16 (!%p214_p2), %v518_v29, %v517_v28  ;;  %v520_v59 = vld [vmem:[%s2365_s5 + $0x38] sm:$0xff] (!%p214_p2)  ;;  %v1402_v62 = vld [vmem:[%s2364_s4] ss:$0 sm:$0xff] (!%p214_p2) }
   0xc   : > { %1578 = vmatpush3.bf16.msra.mxu1 (!%p214_p2), %v1915_v3  ;;  %1821 = vmatprep.subr.bf16.mxu0 (!%p214_p2), %v1958_v24  ;;  %v2093_v60 = vpack.c.bf16 (!%p214_p2), %v520_v59, %v519_v58 }
   0xd   : > { %s2368_s25 = smov (!%p244_p3, %s243_s25), 27  ;;  %1579 = vmatprep.subr.bf16.mxu1 %v1916_v4 }
   0xe   : > { %s1393_s8 = sshll.u32 %s2368_s25, 3 }
   0xf   : > { %s247_s13 = scalar_lea.vmem %s2360_s0, %s1393_s8  ;;  %s2334_s27 = scalar_lea.vmem %s2366_s6, %s1393_s8 }
  0x10   : > { %v256_v5 = vld [vmem:[%s247_s13] sm:$0xff]  ;;  %v257_v6 = vld [vmem:[%s247_s13 + $0x8] sm:$0xff]  ;;  %v258_v7 = vld [vmem:[%s247_s13 + $0x10] sm:$0xff]  ;;  %1580 = vmatpush3.bf16.msra.mxu1 %v1916_v4 }
  0x11   : > { %v263_v8 = vpack.c.bf16 %v257_v6, %v256_v5  ;;  %v259_v9 = vld [vmem:[%s247_s13 + $0x18] sm:$0xff]  ;;  %v260_v10 = vld [vmem:[%s247_s13 + $0x20] sm:$0xff]  ;;  %v261_v11 = vld [vmem:[%s247_s13 + $0x28] sm:$0xff]  ;;  %1581 = vmatprep.subr.bf16.mxu1 %v1917_v14 }
  0x12   : > { %v264_v12 = vpack.c.bf16 %v259_v9, %v258_v7  ;;  %v265_v13 = vpack.c.bf16 %v261_v11, %v260_v10  ;;  %v262_v15 = vld [vmem:[%s247_s13 + $0x30] sm:$0xff] }
  0x13   : > { %1567 = vmatprep.mubr.msk.bf16.mxu0 %vm290_vm0, %v263_v8  ;;  %v266_v17 = vpack.c.bf16 %v262_v15, %v262_v15 }
  0x14   : > { %1568 = vmatmul.mubr.msk.bf16.vlgmr.msra.gmra.mrb[0].mxu0 %vm290_vm0, %v264_v12  ;;  %1582 = vmatpush3.bf16.msra.mxu1 %v1917_v14 }
  0x15   : > { %1571 = vmatprep.mubr.msk.bf16.mxu0 %vm290_vm0, %v265_v13  ;;  %1583 = vmatprep.subr.bf16.mxu1 %v1918_v16 }
  0x16   : > { %1823 = vmatpush3.bf16.msra.mxu0 %v2056_v25 }
  0x17   : > { %1824 = vmatprep.subr.bf16.mxu0 %v1958_v24 }
  0x18   : > { %1584 = vmatpush3.bf16.msra.mxu1 %v1918_v16 }
  0x19   : > { %1585 = vmatprep.subr.bf16.mxu1 %v1919_v18 }
  0x1a   : > { %1826 = vmatpush3.bf16.msra.mxu0 %v2063_v27 }
  0x1b   : > { %1827 = vmatprep.subr.bf16.mxu0 %v1958_v24 }
  0x1c   : > { %1572 = vmatmul.mubr.msk.bf16.gmra.mrb[4].mxu0 %vm290_vm0, %v266_v17  ;;  %1586 = vmatpush3.bf16.msra.mxu1 %v1919_v18 }
  0x1d   : > { %1587 = vmatprep.subr.bf16.mxu1 %v1920_v19  ;;  %1615 = vmatprep.mubr.msk.f32.mxu0 %vm1959_vm1, %v1960_v61 }
  0x1e   : > { %1829 = vmatpush3.bf16.msra.mxu0 %v2073_v30 }
  0x1f   : > { %1830 = vmatprep.subr.bf16.mxu0 %v1958_v24 }
  0x20   : > { %1588 = vmatpush3.bf16.msra.mxu1 %v1920_v19 }
  0x21   : > { %1589 = vmatprep.subr.bf16.mxu1 %v1921_v20 }
  0x22   : > { %1832 = vmatpush3.bf16.msra.mxu0 %v2093_v60 }
  0x23   : > { %1845 = vmatprep.subr.bf16.mxu0 %v1958_v24 }
  0x24   : > { %1590 = vmatpush3.bf16.msra.mxu1 %v1921_v20 }
  0x25   : > { %1833 = vmatprep.subr.bf16.mxu1 %v1958_v24 }
  0xe7   : > { %v1569_v32 = vpop.f32.mrb[0].mxu0 }
  0xe8   : > { %v346_v33 = vadd.f32 %v1569_v32, %v1395_v31  ;;  %v337_v34 = vpop.f32.mrb[1].mxu0 }
  0xe9   : > { %v338_v35 = vadd.f32 %v1395_v31, %v337_v34  ;;  %v1570_v36 = vpop.f32.mrb[2].mxu0 }
  0xea   : > { %v349_v37 = vadd.f32 %v1570_v36, %v1395_v31  ;;  %v340_v38 = vpop.f32.mrb[3].mxu0  ;;  %v369_v40 = vmax.f32 %v346_v33, 0.0 }
  0xeb   : > { %v341_v39 = vadd.f32 %v1395_v31, %v340_v38  ;;  %v367_v42 = vmax.f32 %v338_v35, 0.0 }
  0xec   : > { %v370_v41 = vmax.f32 %v349_v37, 0.0 }
  0xed   : > { %v368_v43 = vmax.f32 %v341_v39, 0.0 }
  0xee   : > { %v375_v44 = vpack.c.bf16 %v370_v41, %v369_v40 }
  0xef   : > { %v1573_v45 = vpop.f32.mrb[4].mxu0  ;;  %v374_v46 = vpack.c.bf16 %v368_v43, %v367_v42 }
  0xf0   : > { %v362_v47 = vadd.f32 %v1573_v45, %v1395_v31  ;;  %v353_v48 = vpop.f32.mrb[5].mxu0 }
  0xf1   : > { %v354_v49 = vadd.f32 %v1395_v31, %v353_v48  ;;  %1591 = vmatprep.mubr.bf16.mxu1 %v374_v46  ;;  %v1574_v50 = vpop.f32.mrb[6].mxu0 }
  0xf2   : > { %v373_v51 = vmax.f32 %v362_v47, 0.0  ;;  %1592 = vmatmul.mubr.bf16.vlgmr.msra.gmra.mrb[0].mxu1 %v375_v44  ;;  %v356_v52 = vpop.f32.mrb[7].mxu0 }
  0xf3   : > { %v371_v53 = vmax.f32 %v354_v49, 0.0  ;;  %v357_v54 = vadd.f32 %v1395_v31, %v356_v52  ;;  %1835 = vmatpush3.bf16.msra.mxu1 %v2056_v25 }
  0xf4   : > { %1836 = vmatprep.subr.bf16.mxu1 %v1958_v24  ;;  %v377_v56 = vpack.c.bf16 %v373_v51, %v373_v51 }
  0xf5   : > { %v372_v55 = vmax.f32 %v357_v54, 0.0 }
  0xf7   : > { %v376_v57 = vpack.c.bf16 %v372_v55, %v371_v53  ;;  %1838 = vmatpush3.bf16.msra.mxu1 %v2063_v27 }
  0xf8   : > { %1839 = vmatprep.subr.bf16.mxu1 %v1958_v24 }
  0xf9   : > { %1595 = vmatprep.mubr.bf16.mxu1 %v376_v57 }
  0xfa   : > { %1596 = vmatmul.mubr.bf16.gmra.mrb[4].mxu1 %v377_v56 }
  0xfb   : > { %1841 = vmatpush3.bf16.msra.mxu1 %v2073_v30  ;;  %1652 = vmatprep.mubr.msk.f32.mxu1 %vm1959_vm1, %v1960_v61 }
  0xfc   : > { %1842 = vmatprep.subr.bf16.mxu1 %v1958_v24 }
  0xff   : > { %1844 = vmatpush3.bf16.msra.mxu1 %v2093_v60 }
 0x100   : > { %1857 = vmatprep.subr.bf16.mxu1 %v1958_v24 }
 0x1c5   : > { %v1593_v63 = vpop.f32.mrb[0].mxu1 }
 0x1c6   : > { %v483_v0 = vpop.f32.mrb[1].mxu1  ;;  %v2121_v7 = vadd.f32 %v1593_v63, %v1402_v62 }
 0x1c7   : > { %v2106_v1 = vadd.f32 %v1402_v62, %v483_v0  ;;  %v1594_v2 = vpop.f32.mrb[2].mxu1 }
 0x1c8   : > { %v486_v3 = vpop.f32.mrb[3].mxu1  ;;  %v2129_v10 = vadd.f32 %v1594_v2, %v1402_v62 }
 0x1c9   : > { %1616 = vmatmul.mubr.msk.f32.vlgmr.msra.gmra.mrb[8].mxu0 %vm521_vm2, %v2106_v1  ;;  %v2113_v4 = vadd.f32 %v1402_v62, %v486_v3 }
 0x1ca   : > { %1618 = vmatprep.mubr.msk.f32.mxu0 %vm1959_vm1, %v1960_v61  ;;  %1847 = vmatpush3.bf16.msra.mxu0 %v2056_v25 }
 0x1cb   : > { %1848 = vmatprep.subr.bf16.mxu0 %v1958_v24 }
 0x1cd   : > { %1619 = vmatmul.mubr.msk.f32.gmra.mrb[10].mxu0 %vm521_vm2, %v2113_v4  ;;  %v1597_v5 = vpop.f32.mrb[4].mxu1 }
 0x1ce   : > { %v499_v6 = vpop.f32.mrb[5].mxu1  ;;  %1621 = vmatprep.mubr.msk.f32.mxu0 %vm1959_vm1, %v1960_v61  ;;  %1850 = vmatpush3.bf16.msra.mxu0 %v2063_v27  ;;  %v2150_v13 = vadd.f32 %v1597_v5, %v1402_v62 }
 0x1cf   : > { %v1598_v8 = vpop.f32.mrb[6].mxu1  ;;  %1851 = vmatprep.subr.bf16.mxu0 %v1958_v24  ;;  %v2137_v11 = vadd.f32 %v1402_v62, %v499_v6 }
 0x1d0   : > { %v502_v9 = vpop.f32.mrb[7].mxu1 }
 0x1d1   : > { %1622 = vmatmul.mubr.msk.f32.gmra.mrb[12].mxu0 %vm521_vm2, %v2121_v7  ;;  %v2144_v12 = vadd.f32 %v1402_v62, %v502_v9 }
 0x1d2   : > { %1624 = vmatprep.mubr.msk.f32.mxu0 %vm1959_vm1, %v1960_v61  ;;  %1853 = vmatpush3.bf16.msra.mxu0 %v2073_v30 }
 0x1d3   : > { %1854 = vmatprep.subr.bf16.mxu0 %v1958_v24 }
 0x1d5   : > { %1625 = vmatmul.mubr.msk.f32.gmra.mrb[14].mxu0 %vm521_vm2, %v2129_v10 }
 0x1d6   : > { %1627 = vmatprep.mubr.msk.f32.mxu0 %vm1959_vm1, %v1960_v61  ;;  %1856 = vmatpush3.bf16.msra.mxu0 %v2093_v60 }
 0x1d7   : > { %1869 = vmatprep.subr.bf16.mxu0 %v1958_v24 }
 0x1d9   : > { %1628 = vmatmul.mubr.msk.f32.gmra.mrb[16].mxu0 %vm521_vm2, %v2137_v11 }
 0x1da   : > { %1630 = vmatprep.mubr.msk.f32.mxu0 %vm1959_vm1, %v1960_v61 }
 0x1dd   : > { %1631 = vmatmul.mubr.msk.f32.gmra.mrb[18].mxu0 %vm521_vm2, %v2144_v12 }
 0x1de   : > { %1633 = vmatprep.mubr.msk.f32.mxu0 %vm1959_vm1, %v1960_v61 }
 0x1e1   : > { %1634 = vmatmul.mubr.msk.f32.gmra.mrb[20].mxu0 %vm521_vm2, %v2150_v13 }
 0x1e2   : > { %1689 = vmatprep.mubr.msk.f32.mxu0 %vm1959_vm1, %v1960_v61 }
 0x29c   : > { %v609_v14 = vpop.f32.mrb[8].mxu0 }
 0x29d   : > { %v1617_v15 = vpop.f32.mrb[9].mxu0  ;;  %1653 = vmatmul.mubr.msk.f32.vlgmr.msra.gmra.mrb[8].mxu1 %vm521_vm2, %v609_v14  ;;  %v643_v32 = vmax.f32 %v2106_v1, %v609_v14 }
 0x29e   : > { %1655 = vmatprep.mubr.msk.f32.mxu1 %vm1959_vm1, %v1960_v61  ;;  %1859 = vmatpush3.bf16.msra.mxu1 %v2056_v25 }
 0x29f   : > { %1860 = vmatprep.subr.bf16.mxu1 %v1958_v24 }
 0x2a0   : > { %v614_v16 = vpop.f32.mrb[10].mxu0 }
 0x2a1   : > { %v1620_v17 = vpop.f32.mrb[11].mxu0  ;;  %1656 = vmatmul.mubr.msk.f32.gmra.mrb[10].mxu1 %vm521_vm2, %v614_v16  ;;  %v644_v36 = vmax.f32 %v2113_v4, %v614_v16 }
 0x2a2   : > { %1658 = vmatprep.mubr.msk.f32.mxu1 %vm1959_vm1, %v1960_v61  ;;  %1862 = vmatpush3.bf16.msra.mxu1 %v2063_v27 }
 0x2a3   : > { %1863 = vmatprep.subr.bf16.mxu1 %v1958_v24 }
 0x2a4   : > { %v619_v18 = vpop.f32.mrb[12].mxu0 }
 0x2a5   : > { %v1623_v19 = vpop.f32.mrb[13].mxu0  ;;  %1659 = vmatmul.mubr.msk.f32.gmra.mrb[12].mxu1 %vm521_vm2, %v619_v18  ;;  %v645_v40 = vmax.f32 %v2121_v7, %v619_v18 }
 0x2a6   : > { %1661 = vmatprep.mubr.msk.f32.mxu1 %vm1959_vm1, %v1960_v61  ;;  %1865 = vmatpush3.bf16.msra.mxu1 %v2073_v30 }
 0x2a7   : > { %1866 = vmatprep.subr.bf16.mxu1 %v1958_v24 }
 0x2a8   : > { %v624_v20 = vpop.f32.mrb[14].mxu0 }
 0x2a9   : > { %v1626_v21 = vpop.f32.mrb[15].mxu0  ;;  %1662 = vmatmul.mubr.msk.f32.gmra.mrb[14].mxu1 %vm521_vm2, %v624_v20  ;;  %v646_v44 = vmax.f32 %v2129_v10, %v624_v20 }
 0x2aa   : > { %1664 = vmatprep.mubr.msk.f32.mxu1 %vm1959_vm1, %v1960_v61  ;;  %1868 = vmatpush3.bf16.msra.mxu1 %v2093_v60 }
 0x2ab   : > { %1893 = vmatprep.subr.bf16.mxu1 %v1958_v24 }
 0x2ac   : > { %v629_v22 = vpop.f32.mrb[16].mxu0 }
 0x2ad   : > { %v1629_v23 = vpop.f32.mrb[17].mxu0  ;;  %1665 = vmatmul.mubr.msk.f32.gmra.mrb[16].mxu1 %vm521_vm2, %v629_v22  ;;  %v647_v48 = vmax.f32 %v2137_v11, %v629_v22 }
 0x2ae   : > { %1667 = vmatprep.mubr.msk.f32.mxu1 %vm1959_vm1, %v1960_v61 }
 0x2b0   : > { %v634_v26 = vpop.f32.mrb[18].mxu0 }
 0x2b1   : > { %v1632_v28 = vpop.f32.mrb[19].mxu0  ;;  %1668 = vmatmul.mubr.msk.f32.gmra.mrb[18].mxu1 %vm521_vm2, %v634_v26  ;;  %v648_v52 = vmax.f32 %v2144_v12, %v634_v26 }
 0x2b2   : > { %1670 = vmatprep.mubr.msk.f32.mxu1 %vm1959_vm1, %v1960_v61 }
 0x2b4   : > { %v639_v29 = vpop.f32.mrb[20].mxu0 }
 0x2b5   : > { %v1635_v31 = vpop.f32.mrb[21].mxu0  ;;  %1671 = vmatmul.mubr.msk.f32.gmra.mrb[20].mxu1 %vm521_vm2, %v639_v29  ;;  %v649_v56 = vmax.f32 %v2150_v13, %v639_v29 }
 0x2b6   : > { %1726 = vmatprep.mubr.msk.f32.mxu1 %vm1959_vm1, %v1960_v61 }
 0x370   : > { %v737_v33 = vpop.f32.mrb[8].mxu1 }
 0x371   : > { %v771_v34 = vmax.f32 %v643_v32, %v737_v33  ;;  %v1654_v35 = vpop.f32.mrb[9].mxu1  ;;  %1690 = vmatmul.mubr.msk.f32.vlgmr.msra.gmra.mrb[22].mxu0 %vm521_vm2, %v737_v33 }
 0x372   : > { %1692 = vmatprep.mubr.msk.f32.mxu0 %vm1959_vm1, %v1960_v61  ;;  %1871 = vmatpush3.bf16.msra.mxu0 %v2056_v25 }
 0x373   : > { %1872 = vmatprep.subr.bf16.mxu0 %v1958_v24 }
 0x374   : > { %v742_v37 = vpop.f32.mrb[10].mxu1 }
 0x375   : > { %v772_v38 = vmax.f32 %v644_v36, %v742_v37  ;;  %v1657_v39 = vpop.f32.mrb[11].mxu1  ;;  %1693 = vmatmul.mubr.msk.f32.gmra.mrb[24].mxu0 %vm521_vm2, %v742_v37 }
 0x376   : > { %1695 = vmatprep.mubr.msk.f32.mxu0 %vm1959_vm1, %v1960_v61  ;;  %1874 = vmatpush3.bf16.msra.mxu0 %v2063_v27 }
 0x377   : > { %1875 = vmatprep.subr.bf16.mxu0 %v1958_v24 }
 0x378   : > { %v747_v41 = vpop.f32.mrb[12].mxu1 }
 0x379   : > { %v773_v42 = vmax.f32 %v645_v40, %v747_v41  ;;  %v1660_v43 = vpop.f32.mrb[13].mxu1  ;;  %1696 = vmatmul.mubr.msk.f32.gmra.mrb[26].mxu0 %vm521_vm2, %v747_v41 }
 0x37a   : > { %1698 = vmatprep.mubr.msk.f32.mxu0 %vm1959_vm1, %v1960_v61  ;;  %1877 = vmatpush3.bf16.msra.mxu0 %v2073_v30 }
 0x37b   : > { %1878 = vmatprep.subr.bf16.mxu0 %v1958_v24 }
 0x37c   : > { %v752_v45 = vpop.f32.mrb[14].mxu1 }
 0x37d   : > { %v774_v46 = vmax.f32 %v646_v44, %v752_v45  ;;  %v1663_v47 = vpop.f32.mrb[15].mxu1  ;;  %1699 = vmatmul.mubr.msk.f32.gmra.mrb[28].mxu0 %vm521_vm2, %v752_v45 }
 0x37e   : > { %1701 = vmatprep.mubr.msk.f32.mxu0 %vm1959_vm1, %v1960_v61  ;;  %1880 = vmatpush3.bf16.msra.mxu0 %v2093_v60 }
 0x37f   : > { %1881 = vmatprep.subr.bf16.mxu0 %v1958_v24 }
 0x380   : > { %v757_v49 = vpop.f32.mrb[16].mxu1 }
 0x381   : > { %v775_v50 = vmax.f32 %v647_v48, %v757_v49  ;;  %v1666_v51 = vpop.f32.mrb[17].mxu1  ;;  %1702 = vmatmul.mubr.msk.f32.gmra.mrb[30].mxu0 %vm521_vm2, %v757_v49 }
 0x382   : > { %1704 = vmatprep.mubr.msk.f32.mxu0 %vm1959_vm1, %v1960_v61 }
 0x384   : > { %v762_v53 = vpop.f32.mrb[18].mxu1 }
 0x385   : > { %v776_v54 = vmax.f32 %v648_v52, %v762_v53  ;;  %v1669_v55 = vpop.f32.mrb[19].mxu1  ;;  %1705 = vmatmul.mubr.msk.f32.gmra.mrb[32].mxu0 %vm521_vm2, %v762_v53 }
 0x386   : > { %1707 = vmatprep.mubr.msk.f32.mxu0 %vm1959_vm1, %v1960_v61 }
 0x388   : > { %v767_v57 = vpop.f32.mrb[20].mxu1 }
 0x389   : > { %v777_v58 = vmax.f32 %v649_v56, %v767_v57  ;;  %v1672_v59 = vpop.f32.mrb[21].mxu1  ;;  %1708 = vmatmul.mubr.msk.f32.gmra.mrb[34].mxu0 %vm521_vm2, %v767_v57 }
 0x38a   : > { %1763 = vmatprep.mubr.msk.f32.mxu0 %vm1959_vm1, %v1960_v61 }
 0x444   : > { %v865_v62 = vpop.f32.mrb[22].mxu0 }
 0x445   : > { %v899_v63 = vmax.f32 %v771_v34, %v865_v62  ;;  %v1691_v0 = vpop.f32.mrb[23].mxu0 }
 0x447   : > { %v906_v2 = vsub.f32 %v2106_v1, %v899_v63 }
 0x448   : > { %v870_v3 = vpop.f32.mrb[24].mxu0 }
 0x449   : > { %v913_v5 = vmul.f32 1.442695, %v906_v2  ;;  %v900_v6 = vmax.f32 %v772_v38, %v870_v3  ;;  %v1694_v8 = vpop.f32.mrb[25].mxu0 }
 0x44b   : > { %1922 = vpow2.f32 %v913_v5  ;;  %v907_v9 = vsub.f32 %v2113_v4, %v900_v6 }
 0x44c   : > { %v875_v14 = vpop.f32.mrb[26].mxu0 }
 0x44d   : > { %v915_v15 = vmul.f32 1.442695, %v907_v9  ;;  %v901_v16 = vmax.f32 %v773_v42, %v875_v14  ;;  %v1697_v17 = vpop.f32.mrb[27].mxu0 }
 0x44f   : > { %1924 = vpow2.f32 %v915_v15  ;;  %v908_v18 = vsub.f32 %v2121_v7, %v901_v16 }
 0x450   : > { %v880_v19 = vpop.f32.mrb[28].mxu0 }
 0x451   : > { %v917_v20 = vmul.f32 1.442695, %v908_v18  ;;  %v902_v21 = vmax.f32 %v774_v46, %v880_v19  ;;  %v1700_v22 = vpop.f32.mrb[29].mxu0 }
 0x453   : > { %1926 = vpow2.f32 %v917_v20  ;;  %v909_v1 = vsub.f32 %v2129_v10, %v902_v21 }
 0x454   : > { %v885_v23 = vpop.f32.mrb[30].mxu0 }
 0x455   : > { %v2225_v26 = vpop.eup %1922  ;;  %v919_v28 = vmul.f32 1.442695, %v909_v1  ;;  %v903_v29 = vmax.f32 %v775_v50, %v885_v23  ;;  %v1703_v4 = vpop.f32.mrb[31].mxu0 }
 0x456   : > { %1727 = vmatmul.mubr.msk.f32.vlgmr.msra.gmra.mrb[22].mxu1 %vm521_vm2, %v2225_v26 }
 0x457   : > { %1928 = vpow2.f32 %v919_v28  ;;  %v910_v31 = vsub.f32 %v2137_v11, %v903_v29  ;;  %1729 = vmatprep.mubr.msk.f32.mxu1 %vm1959_vm1, %v1960_v61  ;;  %1897 = vmatpush3.bf16.msra.mxu1 %v2056_v25 }
 0x458   : > { %v890_v7 = vpop.f32.mrb[32].mxu0  ;;  %1894 = vmatprep.subr.bf16.mxu1 %v1958_v24 }
 0x459   : > { %v2234_v10 = vpop.eup %1924  ;;  %v921_v32 = vmul.f32 1.442695, %v910_v31  ;;  %v904_v33 = vmax.f32 %v776_v54, %v890_v7  ;;  %v1706_v34 = vpop.f32.mrb[33].mxu0 }
 0x45a   : > { %1730 = vmatmul.mubr.msk.f32.gmra.mrb[24].mxu1 %vm521_vm2, %v2234_v10 }
 0x45b   : > { %1930 = vpow2.f32 %v921_v32  ;;  %v911_v35 = vsub.f32 %v2144_v12, %v904_v33  ;;  %1732 = vmatprep.mubr.msk.f32.mxu1 %vm1959_vm1, %v1960_v61  ;;  %1898 = vmatpush3.bf16.msra.mxu1 %v2063_v27 }
 0x45c   : > { %v895_v11 = vpop.f32.mrb[34].mxu0  ;;  %1895 = vmatprep.subr.bf16.mxu1 %v1958_v24 }
 0x45d   : > { %v2243_v36 = vpop.eup %1926  ;;  %v923_v37 = vmul.f32 1.442695, %v911_v35  ;;  %v905_v38 = vmax.f32 %v777_v58, %v895_v11  ;;  %v1709_v39 = vpop.f32.mrb[35].mxu0 }
 0x45e   : > { %1733 = vmatmul.mubr.msk.f32.gmra.mrb[26].mxu1 %vm521_vm2, %v2243_v36 }
 0x45f   : > { %1932 = vpow2.f32 %v923_v37  ;;  %v912_v40 = vsub.f32 %v2150_v13, %v905_v38  ;;  %1735 = vmatprep.mubr.msk.f32.mxu1 %vm1959_vm1, %v1960_v61  ;;  %1899 = vmatpush3.bf16.msra.mxu1 %v2073_v30 }
 0x460   : > { %1896 = vmatprep.subr.bf16.mxu1 %v1958_v24 }
 0x461   : > { %v2252_v12 = vpop.eup %1928  ;;  %v925_v41 = vmul.f32 1.442695, %v912_v40 }
 0x462   : > { %1736 = vmatmul.mubr.msk.f32.gmra.mrb[28].mxu1 %vm521_vm2, %v2252_v12 }
 0x463   : > { %1934 = vpow2.f32 %v925_v41  ;;  %1738 = vmatprep.mubr.msk.f32.mxu1 %vm1959_vm1, %v1960_v61  ;;  %1900 = vmatpush3.bf16.msra.mxu1 %v2093_v60 }
 0x465   : > { %v2259_v13 = vpop.eup %1930 }
 0x466   : > { %1739 = vmatmul.mubr.msk.f32.gmra.mrb[30].mxu1 %vm521_vm2, %v2259_v13 }
 0x467   : > { %1741 = vmatprep.mubr.msk.f32.mxu1 %vm1959_vm1, %v1960_v61 }
 0x469   : > { %v2265_v42 = vpop.eup %1932 }
 0x46a   : > { %1742 = vmatmul.mubr.msk.f32.gmra.mrb[32].mxu1 %vm521_vm2, %v2265_v42 }
 0x46b   : > { %1744 = vmatprep.mubr.msk.f32.mxu1 %vm1959_vm1, %v1960_v61 }
 0x46d   : > { %v2271_v43 = vpop.eup %1934 }
 0x46e   : > { %1745 = vmatmul.mubr.msk.f32.gmra.mrb[34].mxu1 %vm521_vm2, %v2271_v43 }
 0x46f   : > { %1809 = vmatprep.mubr.msk.f32.mxu1 %vm1959_vm1, %v1960_v61 }
 0x529   : > { %v1014_v44 = vpop.f32.mrb[22].mxu1 }
 0x52a   : > { %v1728_v45 = vpop.f32.mrb[23].mxu1  ;;  %1764 = vmatmul.mubr.msk.f32.vlgmr.msra.gmra.mrb[36].mxu0 %vm521_vm2, %v1014_v44 }
 0x52b   : > { %1766 = vmatprep.mubr.msk.f32.mxu0 %vm1959_vm1, %v1960_v61  ;;  %1883 = vmatpush3.bf16.msra.mxu0 %v2056_v25 }
 0x52c   : > { %1884 = vmatprep.subr.bf16.mxu0 %v1958_v24 }
 0x52d   : > { %v1019_v46 = vpop.f32.mrb[24].mxu1 }
 0x52e   : > { %v1731_v47 = vpop.f32.mrb[25].mxu1  ;;  %1767 = vmatmul.mubr.msk.f32.gmra.mrb[38].mxu0 %vm521_vm2, %v1019_v46  ;;  %v1049_v57 = vadd.f32 %v2234_v10, %v1019_v46 }
 0x52f   : > { %1769 = vmatprep.mubr.msk.f32.mxu0 %vm1959_vm1, %v1960_v61  ;;  %1886 = vmatpush3.bf16.msra.mxu0 %v2063_v27 }
 0x530   : > { %1887 = vmatprep.subr.bf16.mxu0 %v1958_v24 }
 0x531   : > { %v1024_v48 = vpop.f32.mrb[26].mxu1 }
 0x532   : > { %v1734_v49 = vpop.f32.mrb[27].mxu1  ;;  %1770 = vmatmul.mubr.msk.f32.gmra.mrb[40].mxu0 %vm521_vm2, %v1024_v48  ;;  %v1050_v63 = vadd.f32 %v2243_v36, %v1024_v48 }
 0x533   : > { %1772 = vmatprep.mubr.msk.f32.mxu0 %vm1959_vm1, %v1960_v61  ;;  %1889 = vmatpush3.bf16.msra.mxu0 %v2073_v30 }
 0x534   : > { %1890 = vmatprep.subr.bf16.mxu0 %v1958_v24 }
 0x535   : > { %v1029_v25 = vpop.f32.mrb[28].mxu1 }
 0x536   : > { %v1737_v50 = vpop.f32.mrb[29].mxu1  ;;  %1773 = vmatmul.mubr.msk.f32.gmra.mrb[42].mxu0 %vm521_vm2, %v1029_v25  ;;  %v1051_v5 = vadd.f32 %v2252_v12, %v1029_v25 }
 0x537   : > { %1775 = vmatprep.mubr.msk.f32.mxu0 %vm1959_vm1, %v1960_v61  ;;  %1892 = vmatpush3.bf16.msra.mxu0 %v2093_v60  ;;  %v1048_v60 = vadd.f32 %v2225_v26, %v1014_v44 }
 0x539   : > { %v1034_v27 = vpop.f32.mrb[30].mxu1 }
 0x53a   : > { %v1740_v51 = vpop.f32.mrb[31].mxu1  ;;  %1776 = vmatmul.mubr.msk.f32.gmra.mrb[44].mxu0 %vm521_vm2, %v1034_v27  ;;  %v1052_v14 = vadd.f32 %v2259_v13, %v1034_v27 }
 0x53b   : > { %1778 = vmatprep.mubr.msk.f32.mxu0 %vm1959_vm1, %v1960_v61 }
 0x53d   : > { %v1039_v52 = vpop.f32.mrb[32].mxu1 }
 0x53e   : > { %v1743_v30 = vpop.f32.mrb[33].mxu1  ;;  %1779 = vmatmul.mubr.msk.f32.gmra.mrb[46].mxu0 %vm521_vm2, %v1039_v52  ;;  %v1053_v18 = vadd.f32 %v2265_v42, %v1039_v52 }
 0x53f   : > { %1781 = vmatprep.mubr.msk.f32.mxu0 %vm1959_vm1, %v1960_v61 }
 0x541   : > { %v1044_v24 = vpop.f32.mrb[34].mxu1 }
 0x542   : > { %v1746_v53 = vpop.f32.mrb[35].mxu1  ;;  %1782 = vmatmul.mubr.msk.f32.gmra.mrb[48].mxu0 %vm521_vm2, %v1044_v24  ;;  %v1054_v22 = vadd.f32 %v2271_v43, %v1044_v24 }
 0x543   : > { %1800 = vmatprep.mubr.msk.f32.mxu0 %vm1959_vm1, %v1960_v61 }
 0x5fd   : > { %v1142_v54 = vpop.f32.mrb[36].mxu0 }
 0x5fe   : > { %v1176_v55 = vadd.f32 %v1142_v54, %v1048_v60  ;;  %v1765_v56 = vpop.f32.mrb[37].mxu0  ;;  %1801 = vmatmul.mubr.msk.f32.vlgmr.msra.gmra.mrb[50].mxu0 %vm521_vm2, %v1142_v54 }
 0x5ff   : > { %1803 = vmatprep.mubr.msk.f32.mxu0 %vm1959_vm1, %v1960_v61 }
 0x601   : > { %v1147_v58 = vpop.f32.mrb[38].mxu0 }
 0x602   : > { %v1177_v59 = vadd.f32 %v1147_v58, %v1049_v57  ;;  %v1768_v62 = vpop.f32.mrb[39].mxu0  ;;  %1804 = vmatmul.mubr.msk.f32.gmra.mrb[52].mxu0 %vm521_vm2, %v1147_v58 }
 0x603   : > { %1806 = vmatprep.mubr.msk.f32.mxu0 %vm1959_vm1, %v1960_v61 }
 0x605   : > { %v1152_v0 = vpop.f32.mrb[40].mxu0 }
 0x606   : > { %v1178_v2 = vadd.f32 %v1152_v0, %v1050_v63  ;;  %v1771_v3 = vpop.f32.mrb[41].mxu0  ;;  %1807 = vmatmul.mubr.msk.f32.gmra.mrb[54].mxu0 %vm521_vm2, %v1152_v0 }
 0x609   : > { %v1157_v6 = vpop.f32.mrb[42].mxu0 }
 0x60a   : > { %v1179_v8 = vadd.f32 %v1157_v6, %v1051_v5  ;;  %v1774_v9 = vpop.f32.mrb[43].mxu0  ;;  %1810 = vmatmul.mubr.msk.f32.vlgmr.msra.gmra.mrb[36].mxu1 %vm521_vm2, %v1157_v6 }
 0x60b   : > { %1812 = vmatprep.mubr.msk.f32.mxu1 %vm1959_vm1, %v1960_v61 }
 0x60d   : > { %v1162_v15 = vpop.f32.mrb[44].mxu0 }
 0x60e   : > { %v1180_v16 = vadd.f32 %v1162_v15, %v1052_v14  ;;  %v1777_v17 = vpop.f32.mrb[45].mxu0  ;;  %1813 = vmatmul.mubr.msk.f32.gmra.mrb[38].mxu1 %vm521_vm2, %v1162_v15 }
 0x60f   : > { %1815 = vmatprep.mubr.msk.f32.mxu1 %vm1959_vm1, %v1960_v61 }
 0x611   : > { %v1167_v19 = vpop.f32.mrb[46].mxu0 }
 0x612   : > { %v1181_v20 = vadd.f32 %v1167_v19, %v1053_v18  ;;  %v1780_v21 = vpop.f32.mrb[47].mxu0  ;;  %1816 = vmatmul.mubr.msk.f32.gmra.mrb[40].mxu1 %vm521_vm2, %v1167_v19 }
 0x613   : > { %1818 = vmatprep.mubr.msk.f32.mxu1 %vm1959_vm1, %v1960_v61 }
 0x615   : > { %v1172_v1 = vpop.f32.mrb[48].mxu0 }
 0x616   : > { %v1182_v23 = vadd.f32 %v1172_v1, %v1054_v22  ;;  %v1783_v28 = vpop.f32.mrb[49].mxu0  ;;  %1819 = vmatmul.mubr.msk.f32.gmra.mrb[42].mxu1 %vm521_vm2, %v1172_v1 }
 0x6d1   : > { %v1270_v29 = vpop.f32.mrb[50].mxu0 }
 0x6d2   : > { %v1304_v4 = vadd.f32 %v1270_v29, %v1176_v55  ;;  %v1802_v31 = vpop.f32.mrb[51].mxu0 }
 0x6d4   : > { %1936 = vrcp.f32 %v1304_v4 }
 0x6d5   : > { %v1275_v7 = vpop.f32.mrb[52].mxu0 }
 0x6d6   : > { %v1305_v32 = vadd.f32 %v1275_v7, %v1177_v59  ;;  %v1805_v33 = vpop.f32.mrb[53].mxu0 }
 0x6d8   : > { %1938 = vrcp.f32 %v1305_v32 }
 0x6d9   : > { %v1280_v34 = vpop.f32.mrb[54].mxu0 }
 0x6da   : > { %v1306_v35 = vadd.f32 %v1280_v34, %v1178_v2  ;;  %v1808_v11 = vpop.f32.mrb[55].mxu0 }
 0x6dc   : > { %1940 = vrcp.f32 %v1306_v35 }
 0x6dd   : > { %v1285_v61 = vpop.f32.mrb[36].mxu1 }
 0x6de   : > { %v1937_v37 = vpop.eup %1936  ;;  %v1307_v38 = vadd.f32 %v1285_v61, %v1179_v8  ;;  %v1811_v39 = vpop.f32.mrb[37].mxu1 }
 0x6df   : > { %v1318_v40 = vmul.f32 %v1937_v37, %v2225_v26 }
 0x6e0   : > { %1942 = vrcp.f32 %v1307_v38 }
 0x6e1   : > { %1325 = vst.msk [vmem:[%s2334_s27] sm:$0xff] %vm521_vm2, %v1318_v40  ;;  %v1290_v41 = vpop.f32.mrb[38].mxu1 }
 0x6e2   : > { %v1939_v44 = vpop.eup %1938  ;;  %v1308_v45 = vadd.f32 %v1290_v41, %v1180_v16  ;;  %v1814_v46 = vpop.f32.mrb[39].mxu1 }
 0x6e3   : > { %v1319_v47 = vmul.f32 %v1939_v44, %v2234_v10 }
 0x6e4   : > { %1944 = vrcp.f32 %v1308_v45 }
 0x6e5   : > { %1326 = vst.msk [vmem:[%s2334_s27 + $0x8] sm:$0xff] %vm521_vm2, %v1319_v47  ;;  %v1295_v48 = vpop.f32.mrb[40].mxu1 }
 0x6e6   : > { %v1941_v49 = vpop.eup %1940  ;;  %v1309_v25 = vadd.f32 %v1295_v48, %v1181_v20  ;;  %v1817_v50 = vpop.f32.mrb[41].mxu1 }
 0x6e7   : > { %v1320_v26 = vmul.f32 %v1941_v49, %v2243_v36 }
 0x6e8   : > { %1946 = vrcp.f32 %v1309_v25 }
 0x6e9   : > { %1327 = vst.msk [vmem:[%s2334_s27 + $0x10] sm:$0xff] %vm521_vm2, %v1320_v26  ;;  %v1300_v27 = vpop.f32.mrb[42].mxu1 }
 0x6ea   : > { %v1943_v51 = vpop.eup %1942  ;;  %v1310_v52 = vadd.f32 %v1300_v27, %v1182_v23  ;;  %v1820_v10 = vpop.f32.mrb[43].mxu1 }
 0x6eb   : > { %v1321_v30 = vmul.f32 %v1943_v51, %v2252_v12 }
 0x6ec   : > { %1948 = vrcp.f32 %v1310_v52 }
 0x6ed   : > { %1328 = vst.msk [vmem:[%s2334_s27 + $0x18] sm:$0xff] %vm521_vm2, %v1321_v30 }
 0x6ee   : > { %v1945_v24 = vpop.eup %1944 }
 0x6ef   : > { %v1322_v53 = vmul.f32 %v1945_v24, %v2259_v13 }
 0x6f1   : > { %1329 = vst.msk [vmem:[%s2334_s27 + $0x20] sm:$0xff] %vm521_vm2, %v1322_v53 }
 0x6f2   : > { %v1947_v60 = vpop.eup %1946 }
 0x6f3   : > { %v1323_v36 = vmul.f32 %v1947_v60, %v2265_v42 }
 0x6f5   : > { %1330 = vst.msk [vmem:[%s2334_s27 + $0x28] sm:$0xff] %vm521_vm2, %v1323_v36 }
 0x6f6   : > { %v1949_v54 = vpop.eup %1948 }
 0x6f7   : > { %v1324_v55 = vmul.f32 %v1949_v54, %v2271_v43 }
 0x6f9   : > { %1331 = vst.msk [vmem:[%s2334_s27 + $0x30] sm:$0xff] %vm521_vm2, %v1324_v55 }
 0x6fa PF: > { %s16_s21 = sadd.s32 1, %s1956_s21  }
 0x6fb   : > { %p13_p4 = scmp.ge.s32.totalorder %s16_s21, 6  }
 0x6fd   :  { %15 = sbr.rel (!%p13_p4) target bundleno = 1 (0x1), region = 74 }

</bundles_post_ra>
